<compile_context>
chip_gen: v7x
topology: tpu7x:2x2x1
jax: 0.10.0
libtpu: 0.0.40
codegen_flags: <defaults>
</compile_context>

<pallas_src>
import functools

import jax
import jax.numpy as jnp
import numpy as np
from jax.experimental import pallas as pl
from jax.experimental.pallas import tpu as pltpu


def _cdiv(a, b):
    return -(-a // b)


def _round_up(x, m):
    return _cdiv(x, m) * m


def _sublane_align(*dtypes):
    # packed dtypes tile (8*32/bits, 128): f32 -> 8, bf16 -> 16, int8 -> 32
    return max(8 * max(1, 4 // jnp.dtype(d).itemsize) for d in dtypes)


def _dice_partial_kernel(x_ref, t_ref, out_ref, *, dense_target, block_span,
                         valid_extent, ragged):
    """Per-(batch, spatial-tile) partial sums: one merged (3, C) block
    holding [tp, sum_target, sum_softmax]."""
    s = pl.program_id(1)

    def body(masked):
        x = x_ref[0].astype(jnp.float32)            # (C, ...) f32 math on-chip
        sp_shape = (1,) + x.shape[1:]               # spatial part, bcast over C

        if masked:
            # ragged last tile: mask spatial positions past the real extent
            idx = (s * block_span
                   + jax.lax.broadcasted_iota(jnp.int32, sp_shape, 1))
            valid = idx < valid_extent
            # clamp BEFORE max/exp: out-of-bounds lanes hold stale VMEM data
            x = jnp.where(valid, x, 0.0)

        # softmax over the channel axis (axis 0) == PyTorch dim=1
        m = jnp.max(x, axis=0, keepdims=True)
        e = jnp.exp(x - m)                                              # EUP
        soft = e * pl.reciprocal(jnp.sum(e, axis=0, keepdims=True),
                                 approx=True)                           # EUP rcp

        def rsum(v):                       # reduce all spatial axes -> (1, C)
            while v.ndim > 1:
                v = jnp.sum(v, axis=-1)
            return v.reshape(1, -1)

        if masked:
            ss = rsum(jnp.where(valid, soft, 0.0))
        else:
            ss = rsum(soft)

        if dense_target:
            tgt = t_ref[0].astype(jnp.float32)      # (C, ...) dense target
            if masked:
                tgt = jnp.where(valid, tgt, 0.0)    # NaN-safe masking
            tp = rsum(soft * tgt)
            st = rsum(tgt)
        else:
            lbl = t_ref[0]                          # (1, ...) int32 class labels
            cls = jax.lax.broadcasted_iota(jnp.int32, x.shape, 0)
            eq = cls == lbl                         # one-hot fused into selects
            if masked:
                eq = jnp.logical_and(eq, valid)
            tp = rsum(jnp.where(eq, soft, 0.0))
            st = rsum(eq.astype(jnp.float32))

        # single merged output block, one HBM writeback per grid step
        out_ref[0, 0, 0:1, :] = tp
        out_ref[0, 0, 1:2, :] = st
        out_ref[0, 0, 2:3, :] = ss

    if ragged:
        last = s == pl.num_programs(1) - 1

        @pl.when(jnp.logical_not(last))
        def _():
            body(masked=False)

        @pl.when(last)
        def _():
            body(masked=True)
    else:
        body(masked=False)


def dice_loss(inp, target, *, vmem_block_budget=24 << 20, min_grid_blocks=8):
    """Pallas DiceLoss.forward.

    `target` may be:
      * an integer class-label map of shape (B, H, W)      -- fast path, or
      * a dense (one-hot) tensor of shape (B, C, H, W)     -- PyTorch interface.
    """
    if inp.ndim != 4:
        raise ValueError(
            "Invalid input shape, we expect BxNxHxW. Got: {}".format(inp.shape))
    if inp.shape[-2:] != target.shape[-2:]:
        raise ValueError(
            "input and target shapes must be the same. Got: {}".format(inp.shape))

    B, C, H, W = inp.shape
    HW = H * W

    if target.ndim == 4:
        if target.shape[1] != C:
            raise ValueError("dense target must have the same channel count as input")
        dense = True
        t_dtype = target.dtype
    elif target.ndim == 3:
        if not jnp.issubdtype(target.dtype, jnp.integer):
            raise ValueError("3-D target must be an integer class-label map")
        dense = False
        t_dtype = jnp.int32
    else:
        raise ValueError("target must be (B, H, W) labels or (B, C, H, W) dense")

    # ---- spatial tiling: large blocks (HBM-bound), bounded by a VMEM budget ----
    x_bpl = C * jnp.dtype(inp.dtype).itemsize                 # bytes per lane (logits)
    t_bpl = C * jnp.dtype(t_dtype).itemsize if dense else 4   # bytes per lane (target)
    lane_cap = max(128, vmem_block_budget // (2 * (x_bpl + t_bpl)))   # 2x = dbl buffer
    want_ns = max(1, _cdiv(min_grid_blocks, B))               # keep both TCs fed

    if HW % 128 == 0:
        # lane-dense layout: spatial fills sublanes+lanes, C is a leading dim
        n_rows = HW // 128
        x = inp.reshape(B, C, n_rows, 128)
        t = (target.reshape(B, C, n_rows, 128) if dense
             else target.reshape(B, 1, n_rows, 128).astype(jnp.int32))
        align = _sublane_align(inp.dtype, t_dtype)
        rows_cap = max(align, (lane_cap // 128) // align * align)
        rows_tile = min(rows_cap,
                        max(align, _round_up(_cdiv(n_rows, want_ns), align)))
        if rows_tile >= n_rows:
            rows_tile = n_rows                   # full-extent block is always legal
        n_s = _cdiv(n_rows, rows_tile)
        ragged = (n_rows % rows_tile) != 0
        span, extent = rows_tile, n_rows
        x_block = (1, C, rows_tile, 128)
        t_block = (1, C, rows_tile, 128) if dense else (1, 1, rows_tile, 128)
        imap = lambda b, s: (b, 0, s, 0)
    else:
        # flat fallback for non-128-aligned spatial extents.  No pad copy: the
        # last block reads out of bounds and is masked (and clamped) in-kernel.
        x = inp.reshape(B, C, HW)
        t = (target.reshape(B, C, HW) if dense
             else target.reshape(B, 1, HW).astype(jnp.int32))
        lane_cap128 = max(128, lane_cap // 128 * 128)
        tile_s = min(lane_cap128, max(128, _round_up(_cdiv(HW, want_ns), 128)))
        if tile_s >= HW:
            tile_s = HW                          # single exact block, no OOB
        n_s = _cdiv(HW, tile_s)
        ragged = (HW % tile_s) != 0
        span, extent = tile_s, HW
        x_block = (1, C, tile_s)
        t_block = (1, C, tile_s) if dense else (1, 1, tile_s)
        imap = lambda b, s: (b, 0, s)

    kernel = functools.partial(_dice_partial_kernel, dense_target=dense,
                               block_span=span, valid_extent=extent,
                               ragged=ragged)

    parts = pl.pallas_call(
        kernel,
        out_shape=jax.ShapeDtypeStruct((B, n_s, 3, C), jnp.float32),
        grid_spec=pltpu.PrefetchScalarGridSpec(
            num_scalar_prefetch=0,
            grid=(B, n_s),
            in_specs=[pl.BlockSpec(x_block, imap),
                      pl.BlockSpec(t_block, imap)],
            out_specs=pl.BlockSpec((1, 1, 3, C), lambda b, s: (b, s, 0, 0)),
        ),
        compiler_params=pltpu.CompilerParams(
            # both grid axes independent -> megacore-shardable (2 TCs on v7x)
            dimension_semantics=("parallel", "parallel"),
            # blocks budgeted to ~24 MiB double-buffered; raise the scoped VMEM
            # limit above the 16/32 MiB defaults (still below v7x's 64 MiB)
            vmem_limit_bytes=48 << 20),
    )(x, t)

    # Tiny finalize in plain JAX:  fn = sum_t - tp,  fp = sum_soft - tp,
    # hence 2*tp + fp + fn == sum_soft + sum_t.
    sums = jnp.sum(parts, axis=(0, 1))            # (3, C)
    tp, st, ss = sums[0], sums[1], sums[2]
    dice = -((2.0 * tp + 1.0) / (ss + st + 1.0))
    return jnp.mean(dice)


def dice_loss_ref(inp, target):
    """Pure-JAX reference, mirroring the PyTorch module exactly."""
    soft = jax.nn.softmax(inp.astype(jnp.float32), axis=1)
    tgt = target.astype(jnp.float32)
    dims = (0, 2, 3)
    tp = jnp.sum(soft * tgt, dims)
    fn = jnp.sum((1.0 - soft) * tgt, dims)
    fp = jnp.sum(soft * (1.0 - tgt), dims)
    dice = -((2.0 * tp + 1.0) / (2.0 * tp + fp + fn + 1.0))
    return jnp.mean(dice)


if __name__ == "__main__":
    key = jax.random.PRNGKey(0)
    k_x, k_l, k_x2, k_l2, k_x3, k_l3 = jax.random.split(key, 6)

    # shapes consistent with the module (n_classes=5)
    B, C, H, W = 2, 5, 16, 16
    x = jax.random.normal(k_x, (B, C, H, W), dtype=jnp.float32)
    labels = jax.random.randint(k_l, (B, H, W), 0, C, dtype=jnp.int32)
    target = jnp.transpose(jax.nn.one_hot(labels, C, dtype=jnp.float32),
                           (0, 3, 1, 2))
    ref = dice_loss_ref(x, target)

    # 1) fast path: integer labels, f32 logits (lane-dense rows layout)
    out = dice_loss(x, labels)
    jax.block_until_ready(out)
    np.testing.assert_allclose(np.asarray(out), np.asarray(ref),
                               rtol=1e-3, atol=1e-3)

    # 2) dense one-hot target (the exact PyTorch interface)
    out_dense = dice_loss(x, target)
    jax.block_until_ready(out_dense)
    np.testing.assert_allclose(np.asarray(out_dense), np.asarray(ref),
                               rtol=1e-3, atol=1e-3)

    # 3) bf16 logits streamed natively (cast to f32 on-chip)
    x_bf16 = x.astype(jnp.bfloat16)
    ref_bf16 = dice_loss_ref(x_bf16.astype(jnp.float32), target)
    out_bf16 = dice_loss(x_bf16, labels)
    jax.block_until_ready(out_bf16)
    np.testing.assert_allclose(np.asarray(out_bf16), np.asarray(ref_bf16),
                               rtol=1e-3, atol=1e-3)

    # 4) non-128-aligned spatial shape -> flat layout, ragged OOB tile + mask
    B2, C2, H2, W2 = 2, 5, 11, 13
    x2 = jax.random.normal(k_x2, (B2, C2, H2, W2), dtype=jnp.float32)
    labels2 = jax.random.randint(k_l2, (B2, H2, W2), 0, C2, dtype=jnp.int32)
    target2 = jnp.transpose(jax.nn.one_hot(labels2, C2, dtype=jnp.float32),
                            (0, 3, 1, 2))
    out2 = dice_loss(x2, labels2)
    jax.block_until_ready(out2)
    np.testing.assert_allclose(np.asarray(out2),
                               np.asarray(dice_loss_ref(x2, target2)),
                               rtol=1e-3, atol=1e-3)

    # 5) 128-aligned but ragged rows tile (13 rows, tile of 8) -> masked last
    #    tile in the rows layout; checked with both label and dense targets
    B3, C3, H3, W3 = 2, 5, 32, 52
    x3 = jax.random.normal(k_x3, (B3, C3, H3, W3), dtype=jnp.float32)
    labels3 = jax.random.randint(k_l3, (B3, H3, W3), 0, C3, dtype=jnp.int32)
    target3 = jnp.transpose(jax.nn.one_hot(labels3, C3, dtype=jnp.float32),
                            (0, 3, 1, 2))
    ref3 = dice_loss_ref(x3, target3)
    out3 = dice_loss(x3, labels3)
    jax.block_until_ready(out3)
    np.testing.assert_allclose(np.asarray(out3), np.asarray(ref3),
                               rtol=1e-3, atol=1e-3)
    out3d = dice_loss(x3, target3)
    jax.block_until_ready(out3d)
    np.testing.assert_allclose(np.asarray(out3d), np.asarray(ref3),
                               rtol=1e-3, atol=1e-3)

    print("KERNEL_OK")
</pallas_src>

<mosaic_0001>
module attributes {stable_mosaic.version = 11 : i64} {
  func.func @_dice_partial_kernel(%arg0: i32, %arg1: i32, %arg2: memref<1x5x2x128xf32, #tpu.memory_space<vmem>>, %arg3: memref<1x1x2x128xi32, #tpu.memory_space<vmem>>, %arg4: memref<1x1x3x5xf32, #tpu.memory_space<vmem>>) attributes {dimension_semantics = [#tpu.dimension_semantics<parallel>, #tpu.dimension_semantics<parallel>], iteration_bounds = array<i64: 2, 1>, scalar_prefetch = 0 : i64, scratch_operands = 0 : i64, tpu.core_type = #tpu.core_type<tc>, window_params = [{transform_indices = @transform_0, window_bounds = array<i64: 1, 5, 2, 128>}, {transform_indices = @transform_1, window_bounds = array<i64: 1, 1, 2, 128>}, {transform_indices = @transform_2, window_bounds = array<i64: 1, 1, 3, 5>}]} {
    %c0 = arith.constant 0 : index
    %c0_0 = arith.constant 0 : index
    %c0_1 = arith.constant 0 : index
    %c0_2 = arith.constant 0 : index
    %0 = vector.load %arg2[%c0, %c0_0, %c0_1, %c0_2] : memref<1x5x2x128xf32, #tpu.memory_space<vmem>>, vector<1x5x2x128xf32>
    %1 = vector.shape_cast %0 : vector<1x5x2x128xf32> to vector<5x2x128xf32>
    %cst = arith.constant dense<0xFF800000> : vector<2x128xf32>
    %2 = vector.multi_reduction <maximumf>, %1, %cst [0] : vector<5x2x128xf32> to vector<2x128xf32>
    %3 = vector.shape_cast %2 : vector<2x128xf32> to vector<1x2x128xf32>
    %4 = vector.broadcast %3 : vector<1x2x128xf32> to vector<5x2x128xf32>
    %5 = arith.subf %1, %4 : vector<5x2x128xf32>
    %6 = math.exp %5 : vector<5x2x128xf32>
    %cst_3 = arith.constant dense<0.000000e+00> : vector<2x128xf32>
    %7 = vector.multi_reduction <add>, %6, %cst_3 [0] : vector<5x2x128xf32> to vector<2x128xf32>
    %8 = vector.shape_cast %7 : vector<2x128xf32> to vector<1x2x128xf32>
    %9 = tpu.reciprocal %8 {approx = true} : vector<1x2x128xf32> -> vector<1x2x128xf32>
    %10 = vector.broadcast %9 : vector<1x2x128xf32> to vector<5x2x128xf32>
    %11 = arith.mulf %6, %10 : vector<5x2x128xf32>
    %cst_4 = arith.constant dense<0.000000e+00> : vector<5x2xf32>
    %12 = vector.multi_reduction <add>, %11, %cst_4 [2] : vector<5x2x128xf32> to vector<5x2xf32>
    %cst_5 = arith.constant dense<0.000000e+00> : vector<5xf32>
    %13 = vector.multi_reduction <add>, %12, %cst_5 [1] : vector<5x2xf32> to vector<5xf32>
    %14 = vector.shape_cast %13 : vector<5xf32> to vector<1x5xf32>
    %c0_6 = arith.constant 0 : index
    %c0_7 = arith.constant 0 : index
    %c0_8 = arith.constant 0 : index
    %c0_9 = arith.constant 0 : index
    %15 = vector.load %arg3[%c0_6, %c0_7, %c0_8, %c0_9] : memref<1x1x2x128xi32, #tpu.memory_space<vmem>>, vector<1x1x2x128xi32>
    %16 = vector.shape_cast %15 : vector<1x1x2x128xi32> to vector<1x2x128xi32>
    %17 = tpu.iota {dimensions = array<i32: 0>} : vector<5x2x128xi32>
    %18 = vector.broadcast %16 : vector<1x2x128xi32> to vector<5x2x128xi32>
    %19 = arith.cmpi eq, %17, %18 : vector<5x2x128xi32>
    %cst_10 = arith.constant 0.000000e+00 : f32
    %20 = vector.broadcast %cst_10 : f32 to vector<5x2x128xf32>
    %21 = arith.select %19, %11, %20 : vector<5x2x128xi1>, vector<5x2x128xf32>
    %cst_11 = arith.constant dense<0.000000e+00> : vector<5x2xf32>
    %22 = vector.multi_reduction <add>, %21, %cst_11 [2] : vector<5x2x128xf32> to vector<5x2xf32>
    %cst_12 = arith.constant dense<0.000000e+00> : vector<5xf32>
    %23 = vector.multi_reduction <add>, %22, %cst_12 [1] : vector<5x2xf32> to vector<5xf32>
    %24 = vector.shape_cast %23 : vector<5xf32> to vector<1x5xf32>
    %25 = arith.extui %19 : vector<5x2x128xi1> to vector<5x2x128xi32>
    %26 = arith.sitofp %25 : vector<5x2x128xi32> to vector<5x2x128xf32>
    %cst_13 = arith.constant dense<0.000000e+00> : vector<5x2xf32>
    %27 = vector.multi_reduction <add>, %26, %cst_13 [2] : vector<5x2x128xf32> to vector<5x2xf32>
    %cst_14 = arith.constant dense<0.000000e+00> : vector<5xf32>
    %28 = vector.multi_reduction <add>, %27, %cst_14 [1] : vector<5x2xf32> to vector<5xf32>
    %29 = vector.shape_cast %28 : vector<5xf32> to vector<1x5xf32>
    %c0_15 = arith.constant 0 : index
    %c0_16 = arith.constant 0 : index
    %c0_17 = arith.constant 0 : index
    %c0_18 = arith.constant 0 : index
    %30 = vector.load %arg4[%c0_15, %c0_16, %c0_17, %c0_18] : memref<1x1x3x5xf32, #tpu.memory_space<vmem>>, vector<1x1x1x5xf32>
    %31 = vector.shape_cast %30 : vector<1x1x1x5xf32> to vector<1x5xf32>
    %32 = vector.shape_cast %24 : vector<1x5xf32> to vector<1x1x1x5xf32>
    tpu.vector_store %arg4[%c0_15, %c0_16, %c0_17, %c0_18], %32 {strides = array<i32>} : memref<1x1x3x5xf32, #tpu.memory_space<vmem>>, vector<1x1x1x5xf32>,
    %c0_19 = arith.constant 0 : index
    %c0_20 = arith.constant 0 : index
    %c1 = arith.constant 1 : index
    %c0_21 = arith.constant 0 : index
    %33 = vector.load %arg4[%c0_19, %c0_20, %c1, %c0_21] : memref<1x1x3x5xf32, #tpu.memory_space<vmem>>, vector<1x1x1x5xf32>
    %34 = vector.shape_cast %33 : vector<1x1x1x5xf32> to vector<1x5xf32>
    %35 = vector.shape_cast %29 : vector<1x5xf32> to vector<1x1x1x5xf32>
    tpu.vector_store %arg4[%c0_19, %c0_20, %c1, %c0_21], %35 {strides = array<i32>} : memref<1x1x3x5xf32, #tpu.memory_space<vmem>>, vector<1x1x1x5xf32>,
    %c0_22 = arith.constant 0 : index
    %c0_23 = arith.constant 0 : index
    %c2 = arith.constant 2 : index
    %c0_24 = arith.constant 0 : index
    %36 = vector.load %arg4[%c0_22, %c0_23, %c2, %c0_24] : memref<1x1x3x5xf32, #tpu.memory_space<vmem>>, vector<1x1x1x5xf32>
    %37 = vector.shape_cast %36 : vector<1x1x1x5xf32> to vector<1x5xf32>
    %38 = vector.shape_cast %14 : vector<1x5xf32> to vector<1x1x1x5xf32>
    tpu.vector_store %arg4[%c0_22, %c0_23, %c2, %c0_24], %38 {strides = array<i32>} : memref<1x1x3x5xf32, #tpu.memory_space<vmem>>, vector<1x1x1x5xf32>,
    return
  }
  func.func @transform_0(%arg0: i32, %arg1: i32) -> (i32, i32, i32, i32) {
    %c0_i32 = arith.constant 0 : i32
    %c0_i32_0 = arith.constant 0 : i32
    %c0_i32_1 = arith.constant 0 : i32
    return %arg0, %c0_i32, %arg1, %c0_i32_0 : i32, i32, i32, i32
  }
  func.func @transform_1(%arg0: i32, %arg1: i32) -> (i32, i32, i32, i32) {
    %c0_i32 = arith.constant 0 : i32
    %c0_i32_0 = arith.constant 0 : i32
    %c0_i32_1 = arith.constant 0 : i32
    return %arg0, %c0_i32, %arg1, %c0_i32_0 : i32, i32, i32, i32
  }
  func.func @transform_2(%arg0: i32, %arg1: i32) -> (i32, i32, i32, i32) {
    %c0_i32 = arith.constant 0 : i32
    %c0_i32_0 = arith.constant 0 : i32
    %c0_i32_1 = arith.constant 0 : i32
    return %arg0, %arg1, %c0_i32, %c0_i32_0 : i32, i32, i32, i32
  }
}

</mosaic_0001>

<bundles_post_ra>
// kernel: tpu_custom_call.1
= control target key start
LH: loop header
LB: loop body
LE: loop exit
PB: predicated region body
PF: predicated region fallthrough
CT: control target
= control target key end

     0   :  { %7 = vsyncpa [#allocation3], 0  ;;  %s1032_s0 = inlined_call_operand.hbm [shape: f32[2,5,2,128], index: 0, kind: input, shape index: {}]   ;;  %s1033_s1 = inlined_call_operand.hbm [shape: s32[2,1,2,128], index: 1, kind: input, shape index: {}]   ;;  %s1034_s2 = inlined_call_operand.vmem [shape: f32[2,1,3,5], index: 2, kind: output, shape index: {}]  }
   0x1   :  { %9 = vsyncpa [#allocation3 + $0x1], 0 }
   0x2   :  { %10 = vsyncpa [#allocation5], 0 }
   0x3   :  { %12 = vsyncpa [#allocation5 + $0x1], 0  ;;  %s804_s9 = smov 0   ;;  %s806_s10 = smov 0  }
   0x4   :  { %s808_s11 = smov 0   ;;  %s810_s12 = smov 0  }
   0x5   :  { %s812_s13 = smov 0   ;;  %s814_s14 = smov 0  }
   0x6 LB: > { %s573_s15 = sadd.s32 4294967295, %s782_s14   ;;  %s30_s16 = sadd.s32 1, %s778_s13  ;;  %s782_s14 = sphi %s814_s14, %s18_s14   ;;  %s778_s13 = sphi %s812_s13, %s1045_s13   ;;  %s774_s12 = sphi %s810_s12, %s1044_s12   ;;  %s770_s11 = sphi %s808_s11, %s1043_s11   ;;  %s766_s10 = sphi %s806_s10, %s1042_s10   ;;  %s762_s9 = sphi %s804_s9, %s1041_s9  }
   0x7   : > { %p32_p0 = scmp.ge.s32.totalorder %s30_s16, 2  ;;  %s39_s17 = sadd.s32 1, %s770_s11 }
   0x8   : > { %p46_p1 = scmp.ne.s32.totalorder %s770_s11, %s766_s10  ;;  %p47_p2 = scmp.eq.s32.totalorder %s782_s14, 0 }
   0x9   : > { %s1047_s16 = smov (%p32_p0, %s30_s16), 0  ;;  %p52_p4 = scmp.ne.s32.totalorder %s766_s10, %s762_s9 }
   0xa   : > { %p48_p3 = por %p47_p2, %p46_p1  ;;  %s34_s18 = ssub.s32 %s778_s13, %s1047_s16 }
   0xb   : > { %p53_p5 = scmp.eq.s32.totalorder %s573_s15, 0  ;;  %p37_p6 = scmp.eq.s32.totalorder %s34_s18, 0 }
   0xc   : > { %p604_p8 = scmp.lt.s32.totalorder %s782_s14, 2  ;;  %s852_s21 = sand.u32 1, %s770_s11  }
   0xd   : > { %p843_p7 = por %p53_p5, %p52_p4  ;;  %s591_s22 = smul.u32 160, %s778_s13 }
   0xe   : > { %s849_s20 = scalar_select %p37_p6, %s770_s11, %s39_s17  }
   0xf   : > { %s1036_s19 = scalar_select %p843_p7, 1, 0 }
  0x10   : > { %s590_s23 = smul.u32 10, %s852_s21  ;;  %s859_s26 = scalar_lea.hbm %s1032_s0, %s591_s22 }
  0x11   : > { %p861_p9 = pnand %p604_p8, %p48_p3  ;;  %s133_s30 = scalar_lea.sflag [#allocation3], %s852_s21 }
  0x12   : > { %s136_s28 = scalar_lea.vmem [#allocation2], %s590_s23  ;;  %s668_s3 = scalar_lea.hbm %s859_s26, 160 }
  0x13   : > { %s144_s29 = sshll.u32 %s136_s28, 4  ;;  %p669_p10 = scmp.ne.s32.totalorder %s859_s26, %s668_s3  ;;  %s865_s29 = int_to_ptr.vmem [resolvable:$true] %s144_s29 }
  0x14   : > { %p670_p11 = pneg %p861_p9  ;;  %s673_s6 = scalar_lea.hbm %s1032_s0, 320 }
  0x15   : > { %p674_p0 = scmp.lt.u32.totalorder %s859_s26, %s1032_s0  ;;  %p675_p1 = scmp.lt.u32.totalorder %s673_s6, %s668_s3 }
  0x16   : > { %p671_p12 = pnand %p670_p11, %p669_p10  ;;  %p677_p3 = scmp.lt.u32.totalorder %s668_s3, %s859_s26 }
  0x17   : > { %p676_p2 = por %p675_p1, %p674_p0 }
  0x18   : > { %p672_p13 = pneg %p671_p12 }
  0x19   : > { %p678_p4 = por %p677_p3, %p676_p2 }
  0x1b   : > { %p679_p5 = pnand %p678_p4, %p672_p13 }
  0x1d   : > { %682 = shalt.err (!%p679_p5)
}
  0x1e   : > { %s683_s9 = scalar_lea.vmem %s865_s29, 160  ;;  %s784_s15 = smov [#allocation2]  }
  0x1f   : > { %p684_p6 = scmp.ne.s32.totalorder %s865_s29, %s683_s9  ;;  %s688_s17 = sshll.u32 %s784_s15, 4  ;;  %s689_s17 = int_to_ptr.vmem [resolvable:$false] %s688_s17 }
  0x20   : > { %s690_s18 = scalar_lea.vmem %s689_s17, 320  ;;  %p691_p12 = scmp.lt.s32.totalorder %s865_s29, %s689_s17 }
  0x21   : > { %p686_p8 = pnand %p684_p6, %p670_p11  ;;  %p692_p0 = scmp.lt.s32.totalorder %s690_s18, %s683_s9 }
  0x23   : > { %p687_p10 = pneg %p686_p8  ;;  %p693_p1 = por %p692_p0, %p691_p12 }
  0x25   : > { %p694_p2 = pnand %p693_p1, %p687_p10 }
  0x27   : > { %697 = shalt.err (!%p694_p2)
}
  0x28   : > { %s785_s22 = smov 32   ;;  %s786_s23 = smov 2  }
  0x29   : > { %600 = dma.hbm_to_vmem [thread:$0]  (!%p861_p9), %s859_s26, 160, %s865_s29, %s133_s30, %s785_s22, %s785_s22, %s786_s23  }
  0x2a   : > { %p580_p13 = scmp.ge.s32.totalorder %s782_s14, 1  ;;  %p171_p3 = scmp.lt.s32.totalorder %s782_s14, 3 }
  0x2b   : > { %s578_s24 = sshll.u32 %s852_s21, 1  ;;  %s579_s28 = sshll.u32 %s778_s13, 5 }
  0x2c   : > { %p898_p4 = pnand %p580_p13, %p171_p3  ;;  %s158_s3 = scalar_lea.vmem [#allocation4], %s578_s24 }
  0x2d   : > { %s166_s4 = sshll.u32 %s158_s3, 4  ;;  %s906_s7 = scalar_lea.hbm %s1033_s1, %s579_s28  ;;  %s167_s4 = int_to_ptr.vmem [resolvable:$true] %s166_s4 }
  0x2e   : > { %s1038_s25 = scalar_select %p898_p4, 1, 0 }
  0x2f   : > { %s155_s26 = scalar_lea.sflag [#allocation5], %s852_s21  ;;  %s698_s29 = scalar_lea.hbm %s906_s7, 32 }
  0x30   : > { %p699_p5 = scmp.ne.s32.totalorder %s906_s7, %s698_s29  ;;  %s703_s9 = scalar_lea.hbm %s1033_s1, 64 }
  0x31   : > { %p704_p10 = scmp.lt.u32.totalorder %s906_s7, %s1033_s1  ;;  %p705_p12 = scmp.lt.u32.totalorder %s703_s9, %s698_s29 }
  0x32   : > { %p701_p6 = pnand %p699_p5, %p670_p11  ;;  %p707_p1 = scmp.lt.u32.totalorder %s698_s29, %s906_s7 }
  0x33   : > { %p706_p0 = por %p705_p12, %p704_p10 }
  0x34   : > { %p702_p8 = pneg %p701_p6 }
  0x35   : > { %p708_p2 = por %p707_p1, %p706_p0 }
  0x37   : > { %p709_p13 = pnand %p708_p2, %p702_p8 }
  0x39   : > { %712 = shalt.err (!%p709_p13)
}
  0x3a   : > { %s713_s21 = scalar_lea.vmem %s167_s4, 32  ;;  %s787_s18 = smov [#allocation4]  }
  0x3b   : > { %p714_p3 = scmp.ne.s32.totalorder %s167_s4, %s713_s21  ;;  %s718_s22 = sshll.u32 %s787_s18, 4  ;;  %s719_s22 = int_to_ptr.vmem [resolvable:$false] %s718_s22 }
  0x3c   : > { %s720_s23 = scalar_lea.vmem %s719_s22, 64  ;;  %p721_p7 = scmp.lt.s32.totalorder %s167_s4, %s719_s22 }
  0x3d   : > { %p716_p5 = pnand %p714_p3, %p670_p11  ;;  %p722_p4 = scmp.lt.s32.totalorder %s720_s23, %s713_s21 }
  0x3f   : > { %p717_p6 = pneg %p716_p5  ;;  %p723_p10 = por %p722_p4, %p721_p7 }
  0x41   : > { %p724_p12 = pnand %p723_p10, %p717_p6 }
  0x43   : > { %727 = shalt.err (!%p724_p12)
}
  0x44   : > { %603 = dma.hbm_to_vmem [thread:$0]  (!%p861_p9), %s906_s7, 32, %s167_s4, %s155_s26  }
  0x45   : > { %p1039_p8 = scmp.ne.s32.totalorder %s1038_s25, 0 }
  0x46   : > { %s177_s24 = sand.u32 (!%p1039_p8), 1, %s766_s10   ;;  %p1040_p11 = scmp.ne.s32.totalorder (!%p1039_p8), %s1036_s19, 0 }
  0x47   : > { %175 = sbr.rel (%p1039_p8) target bundleno = 444 (0x1bc), region = 28  ;;  %s178_s3 = scalar_lea.sflag (!%p1039_p8), [#allocation3], %s177_s24 }
  0x48   : > { %s592_s28 = smul.u32 (!%p1039_p8), 10, %s177_s24 }
  0x4a   : > { %s181_s5 = scalar_lea.vmem (!%p1039_p8), [#allocation2], %s592_s28 }
  0x4e   : > { %753 = dma.done.wait (%p1040_p11), %s178_s3, 160  }
  0x4f   : > { %755 = vsyncadd (%p1040_p11), %s178_s3, 4294967136  ;;  %s581_s6 = sshll.u32 %s177_s24, 1  ;;  %s187_s29 = scalar_lea.sflag [#allocation5], %s177_s24 }
  0x50   : > { %s190_s27 = scalar_lea.vmem [#allocation4], %s581_s6 }
  0x51   : > { %757 = dma.done.wait (%p1040_p11), %s187_s29, 32  }
  0x52   : > { %759 = vsyncadd (%p1040_p11), %s187_s29, 4294967264  ;;  %vm230_vm0 = vcmask 1041408   ;;  %v939_v0 = vld [vmem:[%s190_s27] sm:$0x3]  ;;  %v225_v1 = vld [vmem:[%s181_s5] sm:$0x3] }
  0x53   : > { %v226_v2 = vld [vmem:[%s181_s5 + $0x2] sm:$0x3]  ;;  %vm326_vm1 = vcmp.eq.s32.totalorder %v939_v0, 0  ;;  %vm327_vm2 = vcmp.eq.s32.totalorder %v939_v0, 1  ;;  %vm328_vm3 = vcmp.eq.s32.totalorder %v939_v0, 2  ;;  %vm329_vm4 = vcmp.eq.s32.totalorder %v939_v0, 3 }
  0x54   : > { %v227_v3 = vld [vmem:[%s181_s5 + $0x4] sm:$0x3]  ;;  %v788_v4 = vmov 0.0   ;;  %v228_v9 = vld [vmem:[%s181_s5 + $0x6] sm:$0x3]  ;;  %v231_v14 = vsel %vm230_vm0, %v225_v1, -inf }
  0x55   : > { %v583_v5 = vsel %vm326_vm1, 1.0, %v788_v4  ;;  %v584_v6 = vsel %vm327_vm2, 1.0, %v788_v4  ;;  %v585_v7 = vsel %vm328_vm3, 1.0, %v788_v4  ;;  %v586_v8 = vsel %vm329_vm4, 1.0, %v788_v4  ;;  %v229_v12 = vld [vmem:[%s181_s5 + $0x8] sm:$0x3] }
  0x56   : > { %v394_v10 = vsel %vm230_vm0, %v583_v5, 0.0  ;;  %v397_v11 = vsel %vm230_vm0, %v584_v6, 0.0  ;;  %v400_v13 = vsel %vm230_vm0, %v585_v7, 0.0  ;;  %v233_v15 = vsel %vm230_vm0, %v227_v3, -inf  ;;  %p218_p7 = scmp.lt.s32.totalorder %s774_s12, 1 }
  0x57   : > { %395 = vadd.xlane.f32.xlu0 %v394_v10  ;;  %398 = vadd.xlane.f32.xlu1 %v397_v11  ;;  %v234_v16 = vsel %vm230_vm0, %v228_v9, -inf  ;;  %v403_v17 = vsel %vm230_vm0, %v586_v8, 0.0  ;;  %v232_v18 = vsel %vm230_vm0, %v226_v2, -inf  ;;  %v235_v19 = vsel %vm230_vm0, %v229_v12, -inf }
  0x58   : > { %vm330_vm5 = vcmp.eq.s32.totalorder %v939_v0, 4  ;;  %v236_v20 = vmax.f32 %v231_v14, %v235_v19  ;;  %v238_v21 = vmax.f32 %v233_v15, %v234_v16  ;;  %v290_v10 = vlaneseq  ;;  %s1049_s12 = smov (!%p218_p7, %s774_s12), 1 }
  0x59   : > { %v587_v22 = vsel %vm330_vm5, 1.0, %v788_v4  ;;  %vm312_vm6 = vcmask 1041409   ;;  %vm314_vm7 = vcmask 1042434   ;;  %vm316_vm8 = vcmask 1043459   ;;  %s582_s19 = sshll.u32 %s1049_s12, 2 }
  0x5a   : > { %v966_v23 = vsel %vm230_vm0, %v587_v22, 0.0  ;;  %v237_v24 = vmax.f32 %v236_v20, %v232_v18  ;;  %v293_v14 = vshrl.u32 %v290_v10, 7  ;;  %vm318_vm9 = vcmask 1044484   ;;  %s224_s7 = scalar_lea.vmem %s1034_s2, %s582_s19 }
  0x5b   : > { %401 = vadd.xlane.f32.xlu0 %v400_v13  ;;  %404 = vadd.xlane.f32.xlu1 %v403_v17  ;;  %v291_v13 = vand.u32 127, %v290_v10  ;;  %vm321_vm10 = vcmask 12288   ;;  %vm448_vm11 = vcmask 32768  }
  0x5c   : > { %v239_v25 = vmax.f32 %v237_v24, %v238_v21 }
  0x5d   : > { %v294_v16 = vsub.s32 %v291_v13, %v293_v14 }
  0x5e   : > { %v240_v26 = vsub.f32 %v225_v1, %v239_v25  ;;  %v241_v27 = vsub.f32 %v226_v2, %v239_v25  ;;  %v242_v28 = vsub.f32 %v227_v3, %v239_v25  ;;  %v243_v29 = vsub.f32 %v228_v9, %v239_v25 }
  0x5f   : > { %v244_v30 = vsub.f32 %v229_v12, %v239_v25 }
  0x60   : > { %v245_v31 = vmul.f32 1.442695, %v240_v26  ;;  %v247_v32 = vmul.f32 1.442695, %v241_v27  ;;  %v249_v33 = vmul.f32 1.442695, %v242_v28 }
  0x61   : > { %v251_v34 = vmul.f32 1.442695, %v243_v29  ;;  %v253_v35 = vmul.f32 1.442695, %v244_v30 }
  0x62   : > { %656 = vpow2.f32 %v245_v31 }
  0x63   : > { %658 = vpow2.f32 %v247_v32 }
  0x64   : > { %660 = vpow2.f32 %v249_v33 }
  0x65   : > { %662 = vpow2.f32 %v251_v34 }
  0x66   : > { %664 = vpow2.f32 %v253_v35 }
  0x6c   : > { %v657_v36 = vpop.eup %656 }
  0x6d   : > { %v659_v37 = vpop.eup %658  ;;  %v255_v38 = vsel %vm230_vm0, %v657_v36, 0.0 }
  0x6e   : > { %v661_v39 = vpop.eup %660  ;;  %v256_v40 = vsel %vm230_vm0, %v659_v37, 0.0 }
  0x6f   : > { %v663_v41 = vpop.eup %662  ;;  %v257_v42 = vadd.f32 %v256_v40, %v255_v38  ;;  %v258_v43 = vsel %vm230_vm0, %v661_v39, 0.0 }
  0x70   : > { %v665_v44 = vpop.eup %664  ;;  %v260_v45 = vsel %vm230_vm0, %v663_v41, 0.0 }
  0x71   : > { %v259_v46 = vadd.f32 %v258_v43, %v257_v42  ;;  %v262_v47 = vsel %vm230_vm0, %v665_v44, 0.0 }
  0x73   : > { %v261_v48 = vadd.f32 %v260_v45, %v259_v46 }
  0x75   : > { %v263_v49 = vadd.f32 %v262_v47, %v261_v48 }
  0x77   : > { %666 = vrcp.f32 %v263_v49 }
  0x81   : > { %v667_v50 = vpop.eup %666 }
  0x82   : > { %v268_v51 = vmul.f32 %v667_v50, %v663_v41  ;;  %v265_v52 = vmul.f32 %v667_v50, %v657_v36  ;;  %v266_v53 = vmul.f32 %v667_v50, %v659_v37  ;;  %v267_v59 = vmul.f32 %v667_v50, %v661_v39 }
  0x83   : > { %v269_v63 = vmul.f32 %v667_v50, %v665_v44 }
  0x84   : > { %v279_v54 = vsel %vm230_vm0, %v268_v51, 0.0  ;;  %v270_v55 = vsel %vm230_vm0, %v265_v52, 0.0  ;;  %v331_v56 = vsel %vm326_vm1, %v265_v52, 0.0  ;;  %v273_v58 = vsel %vm230_vm0, %v266_v53, 0.0 }
  0x85   : > { %280 = vadd.xlane.f32.xlu1 %v279_v54  ;;  %271 = vadd.xlane.f32.xlu0 %v270_v55  ;;  %v336_v57 = vsel %vm230_vm0, %v331_v56, 0.0  ;;  %v332_v60 = vsel %vm327_vm2, %v266_v53, 0.0  ;;  %v276_v62 = vsel %vm230_vm0, %v267_v59, 0.0  ;;  %v333_v1 = vsel %vm328_vm3, %v267_v59, 0.0 }
  0x86   : > { %v339_v61 = vsel %vm230_vm0, %v332_v60, 0.0  ;;  %v342_v2 = vsel %vm230_vm0, %v333_v1, 0.0  ;;  %v282_v3 = vsel %vm230_vm0, %v269_v63, 0.0  ;;  %v334_v4 = vsel %vm329_vm4, %v268_v51, 0.0 }
  0x87   : > { %v335_v5 = vsel %vm330_vm5, %v269_v63, 0.0  ;;  %v345_v6 = vsel %vm230_vm0, %v334_v4, 0.0 }
  0x88   : > { %v348_v7 = vsel %vm230_vm0, %v335_v5, 0.0 }
  0x89   : > { %337 = vadd.xlane.f32.xlu1 %v336_v57  ;;  %274 = vadd.xlane.f32.xlu0 %v273_v58 }
  0x8d   : > { %340 = vadd.xlane.f32.xlu1 %v339_v61  ;;  %277 = vadd.xlane.f32.xlu0 %v276_v62 }
  0x91   : > { %343 = vadd.xlane.f32.xlu1 %v342_v2  ;;  %283 = vadd.xlane.f32.xlu0 %v282_v3 }
  0x95   : > { %346 = vadd.xlane.f32.xlu0 %v345_v6  ;;  %349 = vadd.xlane.f32.xlu1 %v348_v7 }
  0x99   : > { %407 = vadd.xlane.f32.xlu0 %v966_v23 }
  0xe4   : > { %v396_v8 = vpop.xlane.xlu0 %395  ;;  %v399_v9 = vpop.xlane.xlu1 %398 }
  0xe5   : > { %v417_v26 = vrot.slane %v396_v8, %v294_v16  ;;  %v421_v27 = vrot.slane %v399_v9, %v294_v16 }
  0xe7   : > { %v434_v38 = vsel %vm312_vm6, %v421_v27, %v417_v26 }
  0xe8   : > { %v402_v11 = vpop.xlane.xlu0 %401  ;;  %v405_v12 = vpop.xlane.xlu1 %404 }
  0xe9   : > { %v425_v36 = vrot.slane %v402_v11, %v294_v16  ;;  %v429_v45 = vrot.slane %v405_v12, %v294_v16 }
  0xeb   : > { %v435_v47 = vsel %vm314_vm7, %v425_v36, %v434_v38 }
  0xec   : > { %v436_v53 = vsel %vm316_vm8, %v429_v45, %v435_v47 }
 0x112   : > { %v281_v15 = vpop.xlane.xlu1 %280  ;;  %v272_v0 = vpop.xlane.xlu0 %271 }
 0x113   : > { %v295_v20 = vrot.slane %v272_v0, %v294_v16  ;;  %v307_v28 = vrot.slane %v281_v15, %v294_v16 }
 0x116   : > { %v338_v17 = vpop.xlane.xlu1 %337  ;;  %v275_v18 = vpop.xlane.xlu0 %274 }
 0x117   : > { %v299_v19 = vrot.slane %v275_v18, %v294_v16  ;;  %v359_v31 = vrot.slane %v338_v17, %v294_v16 }
 0x119   : > { %v313_v23 = vsel %vm312_vm6, %v299_v19, %v295_v20 }
 0x11a   : > { %v341_v21 = vpop.xlane.xlu1 %340  ;;  %v278_v22 = vpop.xlane.xlu0 %277 }
 0x11b   : > { %v303_v24 = vrot.slane %v278_v22, %v294_v16  ;;  %v363_v32 = vrot.slane %v341_v21, %v294_v16 }
 0x11d   : > { %v315_v25 = vsel %vm314_vm7, %v303_v24, %v313_v23  ;;  %v376_v42 = vsel %vm312_vm6, %v363_v32, %v359_v31 }
 0x11e   : > { %v344_v29 = vpop.xlane.xlu1 %343  ;;  %v284_v30 = vpop.xlane.xlu0 %283  ;;  %v317_v35 = vsel %vm316_vm8, %v307_v28, %v315_v25 }
 0x11f   : > { %v311_v33 = vrot.slane %v284_v30, %v294_v16  ;;  %v367_v34 = vrot.slane %v344_v29, %v294_v16 }
 0x121   : > { %v319_v37 = vsel %vm318_vm9, %v311_v33, %v317_v35  ;;  %v377_v46 = vsel %vm314_vm7, %v367_v34, %v376_v42 }
 0x122   : > { %v347_v39 = vpop.xlane.xlu0 %346  ;;  %v350_v40 = vpop.xlane.xlu1 %349  ;;  %v322_v41 = vsel %vm321_vm10, %v319_v37, 0.0 }
 0x123   : > { %v371_v43 = vrot.slane %v347_v39, %v294_v16  ;;  %v375_v44 = vrot.slane %v350_v40, %v294_v16  ;;  %323 = vadd.xlane.f32.xlu1 %v322_v41 }
 0x125   : > { %v378_v48 = vsel %vm316_vm8, %v371_v43, %v377_v46 }
 0x126   : > { %v408_v49 = vpop.xlane.xlu0 %407  ;;  %v379_v50 = vsel %vm318_vm9, %v375_v44, %v378_v48 }
 0x127   : > { %v433_v51 = vrot.slane %v408_v49, %v294_v16  ;;  %v381_v52 = vsel %vm321_vm10, %v379_v50, 0.0 }
 0x128   : > { %382 = vadd.xlane.f32.xlu0 %v381_v52 }
 0x129   : > { %v437_v54 = vsel %vm318_vm9, %v433_v51, %v436_v53 }
 0x12a   : > { %v439_v55 = vsel %vm321_vm10, %v437_v54, 0.0 }
 0x12b   : > { %440 = vadd.xlane.f32.xlu1 %v439_v55 }
 0x1b0   : > { %v324_v56 = vpop.xlane.xlu1 %323 }
 0x1b1   : > { %v461_v57 = vrot.slane %v324_v56, %v294_v16 }
 0x1b3   : > { %463 = vst.msk [vmem:[%s224_s7 + $0x2] sm:$0x1] %vm448_vm11, %v461_v57 }
 0x1b5   : > { %v383_v58 = vpop.xlane.xlu0 %382 }
 0x1b6   : > { %v446_v59 = vrot.slane %v383_v58, %v294_v16 }
 0x1b8   : > { %449 = vst.msk [vmem:[%s224_s7] sm:$0x1] %vm448_vm11, %v446_v59  ;;  %v441_v60 = vpop.xlane.xlu1 %440 }
 0x1b9   : > { %v454_v61 = vrot.slane %v441_v60, %v294_v16 }
 0x1bb   : > { %456 = vst.msk [vmem:[%s224_s7 + $0x1] sm:$0x1] %vm448_vm11, %v454_v61 }
 0x1bc PF: > { %s18_s14 = sadd.s32 1, %s782_s14   ;;  %s1041_s9 = smov %s766_s10 }
 0x1bd   : > { %p15_p9 = scmp.ge.s32.totalorder %s18_s14, 4   ;;  %s1042_s10 = smov %s770_s11 }
 0x1be   : > { %s1043_s11 = smov %s849_s20  ;;  %s1044_s12 = smov %s778_s13 }
 0x1bf   : > { %s1045_s13 = smov %s1047_s16  ;;  %17 = sbr.rel (!%p15_p9) target bundleno = 6 (0x6), region = 81 }
 0x1c6   :  { %489 = vsyncpa [#allocation3], 1 }
 0x1c7   :  { %491 = vsyncpa [#allocation3 + $0x1], 1 }
 0x1c8   :  { %492 = vsyncpa [#allocation5], 1 }
 0x1c9   :  { %494 = vsyncpa [#allocation5 + $0x1], 1 }

</bundles_post_ra>
